<compile_context>
chip_gen: v6e
topology: v6e:2x2x1
jax: 0.10.0
libtpu: 0.0.40
codegen_flags: <defaults>
</compile_context>

<pallas_src>
import math

import jax
import jax.numpy as jnp
from jax.experimental import pallas as pl
from jax.experimental.pallas import tpu as pltpu

# ---- module hyper-parameters (PyTorch LogMels defaults) ---------------------
SAMPLE_RATE = 16000
N_FFT = 400
WIN_LENGTH = 400
HOP_LENGTH = 160
N_MELS = 80
NUM_FRAMES_TO_STACK = 4
N_FREQS = N_FFT // 2 + 1                      # 201 one-sided rFFT bins
N_FREQ_PAD = ((N_FREQS + 127) // 128) * 128   # 256: lane-dense intermediate

_INV_LN10 = 1.0 / math.log(10.0)


def _hz_to_mel(f):
    return 2595.0 * jnp.log10(1.0 + f / 700.0)


def _mel_to_hz(m):
    return 700.0 * (10.0 ** (m / 2595.0) - 1.0)


def build_constants(dtype=jnp.float32):
    """Windowed rDFT matrices + HTK mel filterbank (torchaudio MelSpectrogram defaults)."""
    # periodic Hann window (torch.hann_window default)
    n = jnp.arange(N_FFT, dtype=jnp.float32)
    window = 0.5 - 0.5 * jnp.cos(2.0 * jnp.pi * n / N_FFT)

    # real DFT matrices with the window folded in; phase computed mod N for accuracy
    nk = (jnp.arange(N_FFT, dtype=jnp.int32)[:, None]
          * jnp.arange(N_FREQS, dtype=jnp.int32)[None, :]) % N_FFT
    ang = (2.0 * jnp.pi / N_FFT) * nk.astype(jnp.float32)
    wr = window[:, None] * jnp.cos(ang)                    # [N_FFT, N_FREQS]
    wi = -window[:, None] * jnp.sin(ang)                   # sign irrelevant (squared)

    # HTK-scale mel filterbank, norm=None (torchaudio.functional.melscale_fbanks)
    all_freqs = jnp.linspace(0.0, SAMPLE_RATE / 2.0, N_FREQS)
    m_pts = jnp.linspace(_hz_to_mel(0.0), _hz_to_mel(SAMPLE_RATE / 2.0), N_MELS + 2)
    f_pts = _mel_to_hz(m_pts)
    f_diff = f_pts[1:] - f_pts[:-1]                        # [N_MELS+1]
    slopes = f_pts[None, :] - all_freqs[:, None]           # [N_FREQS, N_MELS+2]
    down = (-slopes[:, :-2]) / f_diff[:-1]
    up = slopes[:, 2:] / f_diff[1:]
    fb = jnp.maximum(0.0, jnp.minimum(down, up))           # [N_FREQS, N_MELS]

    # pad the frequency axis to a multiple of 128 (padded bins carry zero weight)
    pad = N_FREQ_PAD - N_FREQS
    wr_p = jnp.pad(wr, ((0, 0), (0, pad))).astype(dtype)
    wi_p = jnp.pad(wi, ((0, 0), (0, pad))).astype(dtype)
    fb_p = jnp.pad(fb, ((0, pad), (0, 0))).astype(dtype)
    return wr_p, wi_p, fb_p, fb


def _logmels_kernel(frames_ref, wr_ref, wi_ref, mel_ref, o_ref):
    """One batch element per grid step; the whole utterance is one VMEM tile.

    frames_ref : [1, L, N_FFT]       un-windowed frames (window folded into wr/wi)
    wr_ref/wi_ref : [N_FFT, N_FREQ_PAD]  resident across the grid (constant index_map)
    mel_ref    : [N_FREQ_PAD, N_MELS]
    o_ref      : [1, L, N_MELS]
    """
    x = frames_ref[0]                                            # [L, N_FFT]
    re = jnp.dot(x, wr_ref[...], preferred_element_type=jnp.float32)
    im = jnp.dot(x, wi_ref[...], preferred_element_type=jnp.float32)
    power = re * re + im * im                                    # [L, N_FREQ_PAD]
    mel = jnp.dot(power, mel_ref[...], preferred_element_type=jnp.float32)
    logspec = jnp.log(jnp.maximum(mel, 1e-10)) * _INV_LN10       # clip_(1e-10).log10_()
    mx = jnp.max(jnp.max(logspec, axis=-1, keepdims=True), axis=-2, keepdims=True)
    o_ref[0] = jnp.maximum(logspec, mx - 8.0) * 0.25 + 1.0       # max(., mx-8)/4 + 1


def logmels_forward(wave):
    """Equivalent of LogMels.forward(wave) -> [B, L/stack, stack*n_mels]."""
    B, T = wave.shape
    L = T // HOP_LENGTH
    assert L % NUM_FRAMES_TO_STACK == 0, "pad T so T//hop is a multiple of the stack"
    wr, wi, fb_p, _ = build_constants()

    # center=True reflect padding + overlapping-frame gather (pure data movement)
    pad = N_FFT // 2
    padded = jnp.pad(wave, ((0, 0), (pad, pad)), mode="reflect")
    idx = jnp.arange(L)[:, None] * HOP_LENGTH + jnp.arange(N_FFT)[None, :]
    frames = padded[:, idx].astype(jnp.float32)                  # [B, L, N_FFT]

    out = pl.pallas_call(
        _logmels_kernel,
        out_shape=jax.ShapeDtypeStruct((B, L, N_MELS), jnp.float32),
        grid_spec=pltpu.PrefetchScalarGridSpec(
            num_scalar_prefetch=0,
            grid=(B,),
            in_specs=[
                pl.BlockSpec((1, L, N_FFT), lambda b: (b, 0, 0)),
                pl.BlockSpec((N_FFT, N_FREQ_PAD), lambda b: (0, 0)),
                pl.BlockSpec((N_FFT, N_FREQ_PAD), lambda b: (0, 0)),
                pl.BlockSpec((N_FREQ_PAD, N_MELS), lambda b: (0, 0)),
            ],
            out_specs=pl.BlockSpec((1, L, N_MELS), lambda b: (b, 0, 0)),
        ),
        compiler_params=pltpu.CompilerParams(
            dimension_semantics=("parallel",)),   # batch steps independent -> megacore
    )(frames, wr, wi, fb_p)

    # frame stacking: [B, L, n_mels] -> [B, L/stack, stack*n_mels]  (a view in torch)
    return out.reshape(B, L // NUM_FRAMES_TO_STACK, NUM_FRAMES_TO_STACK * N_MELS)


def logmels_reference(wave):
    """Independent pure-JAX reference using jnp.fft.rfft."""
    B, T = wave.shape
    L = T // HOP_LENGTH
    n = jnp.arange(N_FFT, dtype=jnp.float32)
    window = 0.5 - 0.5 * jnp.cos(2.0 * jnp.pi * n / N_FFT)
    _, _, _, fb = build_constants()
    pad = N_FFT // 2
    padded = jnp.pad(wave, ((0, 0), (pad, pad)), mode="reflect")
    idx = jnp.arange(L)[:, None] * HOP_LENGTH + jnp.arange(N_FFT)[None, :]
    frames = padded[:, idx] * window[None, None, :]
    spec = jnp.fft.rfft(frames, n=N_FFT, axis=-1)
    power = jnp.abs(spec) ** 2                                    # [B, L, N_FREQS]
    mel = jnp.einsum("blf,fm->blm", power, fb,
                     precision=jax.lax.Precision.HIGHEST)
    logspec = jnp.log10(jnp.maximum(mel, 1e-10))
    mx = jnp.max(logspec, axis=(-2, -1), keepdims=True)
    out = jnp.maximum(logspec, mx - 8.0) / 4.0 + 1.0
    return out.reshape(B, L // NUM_FRAMES_TO_STACK, NUM_FRAMES_TO_STACK * N_MELS)


if __name__ == "__main__":
    B, T = 2, HOP_LENGTH * 16          # 16 frames -> stacked output [2, 4, 320]
    key = jax.random.PRNGKey(0)
    wave = jax.random.normal(key, (B, T), dtype=jnp.float32)

    out = logmels_forward(wave)
    out = jax.block_until_ready(out)

    ref = logmels_reference(wave)
    L = T // HOP_LENGTH
    assert out.shape == (B, L // NUM_FRAMES_TO_STACK, NUM_FRAMES_TO_STACK * N_MELS)
    assert out.dtype == jnp.float32
    assert bool(jnp.all(jnp.isfinite(out)))

    diff = jnp.abs(out - ref)
    # statistical tolerances: robust to MXU / TPU-FFT rounding, still catches real bugs
    assert float(jnp.mean(diff)) < 5e-3, f"mean diff {float(jnp.mean(diff))}"
    assert float(jnp.percentile(diff, 99.0)) < 5e-2, f"p99 diff {float(jnp.percentile(diff, 99.0))}"
    assert float(jnp.max(diff)) < 1.0, f"max diff {float(jnp.max(diff))}"

    print("KERNEL_OK")
</pallas_src>

<mosaic_0001>
module attributes {stable_mosaic.version = 11 : i64} {
  func.func @_logmels_kernel(%arg0: i32, %arg1: memref<1x16x400xf32, #tpu.memory_space<vmem>>, %arg2: memref<400x256xf32, #tpu.memory_space<vmem>>, %arg3: memref<400x256xf32, #tpu.memory_space<vmem>>, %arg4: memref<256x80xf32, #tpu.memory_space<vmem>>, %arg5: memref<1x16x80xf32, #tpu.memory_space<vmem>>) attributes {dimension_semantics = [#tpu.dimension_semantics<parallel>], iteration_bounds = array<i64: 2>, scalar_prefetch = 0 : i64, scratch_operands = 0 : i64, tpu.core_type = #tpu.core_type<tc>, window_params = [{transform_indices = @transform_0, window_bounds = array<i64: 1, 16, 400>}, {pipeline_mode = #tpu.pipeline_mode<synchronous>, transform_indices = @transform_1, window_bounds = array<i64: 400, 256>}, {pipeline_mode = #tpu.pipeline_mode<synchronous>, transform_indices = @transform_2, window_bounds = array<i64: 400, 256>}, {pipeline_mode = #tpu.pipeline_mode<synchronous>, transform_indices = @transform_3, window_bounds = array<i64: 256, 80>}, {transform_indices = @transform_4, window_bounds = array<i64: 1, 16, 80>}]} {
    %c0 = arith.constant 0 : index
    %c0_0 = arith.constant 0 : index
    %c0_1 = arith.constant 0 : index
    %0 = vector.load %arg1[%c0, %c0_0, %c0_1] : memref<1x16x400xf32, #tpu.memory_space<vmem>>, vector<1x16x400xf32>
    %1 = vector.shape_cast %0 : vector<1x16x400xf32> to vector<16x400xf32>
    %c0_2 = arith.constant 0 : index
    %c0_3 = arith.constant 0 : index
    %2 = vector.load %arg2[%c0_2, %c0_3] : memref<400x256xf32, #tpu.memory_space<vmem>>, vector<400x256xf32>
    %cst = arith.constant dense<0.000000e+00> : vector<16x256xf32>
    %3 = tpu.matmul %1, %2, %cst {dimension_numbers = #tpu.dot_dimension_numbers<[1], [0], [0], [1], [0, 0, 1, 1], [], []>} : vector<16x400xf32>, vector<400x256xf32>, vector<16x256xf32> -> vector<16x256xf32>
    %c0_4 = arith.constant 0 : index
    %c0_5 = arith.constant 0 : index
    %4 = vector.load %arg3[%c0_4, %c0_5] : memref<400x256xf32, #tpu.memory_space<vmem>>, vector<400x256xf32>
    %cst_6 = arith.constant dense<0.000000e+00> : vector<16x256xf32>
    %5 = tpu.matmul %1, %4, %cst_6 {dimension_numbers = #tpu.dot_dimension_numbers<[1], [0], [0], [1], [0, 0, 1, 1], [], []>} : vector<16x400xf32>, vector<400x256xf32>, vector<16x256xf32> -> vector<16x256xf32>
    %6 = arith.mulf %3, %3 : vector<16x256xf32>
    %7 = arith.mulf %5, %5 : vector<16x256xf32>
    %8 = arith.addf %6, %7 : vector<16x256xf32>
    %c0_7 = arith.constant 0 : index
    %c0_8 = arith.constant 0 : index
    %9 = vector.load %arg4[%c0_7, %c0_8] : memref<256x80xf32, #tpu.memory_space<vmem>>, vector<256x80xf32>
    %cst_9 = arith.constant dense<0.000000e+00> : vector<16x80xf32>
    %10 = tpu.matmul %8, %9, %cst_9 {dimension_numbers = #tpu.dot_dimension_numbers<[1], [0], [0], [1], [0, 0, 1, 1], [], []>} : vector<16x256xf32>, vector<256x80xf32>, vector<16x80xf32> -> vector<16x80xf32>
    %cst_10 = arith.constant 1.000000e-10 : f32
    %11 = vector.broadcast %cst_10 : f32 to vector<16x80xf32>
    %12 = arith.maximumf %10, %11 : vector<16x80xf32>
    %13 = math.log %12 : vector<16x80xf32>
    %cst_11 = arith.constant 0.434294492 : f32
    %14 = vector.broadcast %cst_11 : f32 to vector<16x80xf32>
    %15 = arith.mulf %13, %14 : vector<16x80xf32>
    %cst_12 = arith.constant dense<0xFF800000> : vector<16xf32>
    %16 = vector.multi_reduction <maximumf>, %15, %cst_12 [1] : vector<16x80xf32> to vector<16xf32>
    %17 = vector.shape_cast %16 : vector<16xf32> to vector<16x1xf32>
    %cst_13 = arith.constant dense<0xFF800000> : vector<1xf32>
    %18 = vector.multi_reduction <maximumf>, %17, %cst_13 [0] : vector<16x1xf32> to vector<1xf32>
    %19 = vector.shape_cast %18 : vector<1xf32> to vector<1x1xf32>
    %cst_14 = arith.constant 8.000000e+00 : f32
    %20 = vector.broadcast %cst_14 : f32 to vector<1x1xf32>
    %21 = arith.subf %19, %20 : vector<1x1xf32>
    %22 = vector.broadcast %21 : vector<1x1xf32> to vector<16x80xf32>
    %23 = arith.maximumf %15, %22 : vector<16x80xf32>
    %cst_15 = arith.constant 2.500000e-01 : f32
    %24 = vector.broadcast %cst_15 : f32 to vector<16x80xf32>
    %25 = arith.mulf %23, %24 : vector<16x80xf32>
    %cst_16 = arith.constant 1.000000e+00 : f32
    %26 = vector.broadcast %cst_16 : f32 to vector<16x80xf32>
    %27 = arith.addf %25, %26 : vector<16x80xf32>
    %c0_17 = arith.constant 0 : index
    %c0_18 = arith.constant 0 : index
    %c0_19 = arith.constant 0 : index
    %28 = vector.load %arg5[%c0_17, %c0_18, %c0_19] : memref<1x16x80xf32, #tpu.memory_space<vmem>>, vector<1x16x80xf32>
    %29 = vector.shape_cast %28 : vector<1x16x80xf32> to vector<16x80xf32>
    %30 = vector.shape_cast %27 : vector<16x80xf32> to vector<1x16x80xf32>
    tpu.vector_store %arg5[%c0_17, %c0_18, %c0_19], %30 {strides = array<i32>} : memref<1x16x80xf32, #tpu.memory_space<vmem>>, vector<1x16x80xf32>,
    return
  }
  func.func @transform_0(%arg0: i32) -> (i32, i32, i32) {
    %c0_i32 = arith.constant 0 : i32
    %c0_i32_0 = arith.constant 0 : i32
    %c0_i32_1 = arith.constant 0 : i32
    return %arg0, %c0_i32, %c0_i32_0 : i32, i32, i32
  }
  func.func @transform_1(%arg0: i32) -> (i32, i32) {
    %c0_i32 = arith.constant 0 : i32
    %c0_i32_0 = arith.constant 0 : i32
    %c0_i32_1 = arith.constant 0 : i32
    return %c0_i32, %c0_i32_0 : i32, i32
  }
  func.func @transform_2(%arg0: i32) -> (i32, i32) {
    %c0_i32 = arith.constant 0 : i32
    %c0_i32_0 = arith.constant 0 : i32
    %c0_i32_1 = arith.constant 0 : i32
    return %c0_i32, %c0_i32_0 : i32, i32
  }
  func.func @transform_3(%arg0: i32) -> (i32, i32) {
    %c0_i32 = arith.constant 0 : i32
    %c0_i32_0 = arith.constant 0 : i32
    %c0_i32_1 = arith.constant 0 : i32
    return %c0_i32, %c0_i32_0 : i32, i32
  }
  func.func @transform_4(%arg0: i32) -> (i32, i32, i32) {
    %c0_i32 = arith.constant 0 : i32
    %c0_i32_0 = arith.constant 0 : i32
    %c0_i32_1 = arith.constant 0 : i32
    return %arg0, %c0_i32, %c0_i32_0 : i32, i32, i32
  }
}

</mosaic_0001>

<bundles_post_ra>
// kernel: tpu_custom_call.1
= control target key start
LH: loop header
LB: loop body
LE: loop exit
PB: predicated region body
PF: predicated region fallthrough
CT: control target
= control target key end

     0   :  { %9 = vsyncpa [#allocation3], 0  ;;  %s1590_s0 = inlined_call_operand.vmem [shape: f32[2,16,400], index: 0, kind: input, shape index: {}]   ;;  %s1591_s1 = inlined_call_operand.hbm [shape: f32[400,256], index: 1, kind: input, shape index: {}]   ;;  %s1592_s2 = inlined_call_operand.hbm [shape: f32[400,256], index: 2, kind: input, shape index: {}]   ;;  %s1593_s3 = inlined_call_operand.vmem [shape: f32[256,80], index: 3, kind: input, shape index: {}]   ;;  %s1594_s4 = inlined_call_operand.hbm [shape: f32[2,16,80], index: 4, kind: output, shape index: {}]  }
   0x1   :  { %10 = vsyncpa [#allocation6], 0 }
   0x2   :  { %11 = vsyncpa [#allocation4], 0 }
   0x3   :  { %13 = vsyncpa [#allocation4 + $0x1], 0  ;;  %s1312_s15 = smov 0   ;;  %s1314_s16 = smov 0  }
   0x4   :  { %s1316_s17 = smov 0   ;;  %s1318_s18 = smov 0  }
   0x5 LB: > { %s1333_s19 = sadd.s32 4294967295, %s1278_s18   ;;  %s997_s20 = sadd.s32 4294967294, %s1278_s18   ;;  %s1278_s18 = sphi %s1318_s18, %s1608_s18   ;;  %s1274_s17 = sphi %s1316_s17, %s1607_s17   ;;  %s1270_s16 = sphi %s1314_s16, %s1606_s16   ;;  %s1266_s15 = sphi %s1312_s15, %s1605_s15  }
   0x6   : > { %s1337_s21 = sadd.s32 1, %s1278_s18   ;;  %s115_s22 = sadd.s32 1, %s1274_s17 }
   0x7   : > { %s112_s23 = ssub.s32 %s1278_s18, %s1337_s21  ;;  %p125_p0 = scmp.ne.s32.totalorder %s1274_s17, %s1270_s16 }
   0x8   : > { %p113_p1 = scmp.eq.s32.totalorder %s112_s23, 0  ;;  %p126_p2 = scmp.eq.s32.totalorder %s1333_s19, 1 }
   0x9   : > { %p131_p3 = scmp.ne.s32.totalorder %s1270_s16, %s1266_s15  ;;  %p132_p4 = scmp.eq.s32.totalorder %s997_s20, 1 }
   0xa   : > { %s1348_s24 = scalar_select %p113_p1, %s1274_s17, %s115_s22  }
   0xb   : > { %p1350_p5 = por %p126_p2, %p125_p0  ;;  %p1354_p6 = por %p132_p4, %p131_p3 }
   0xc   : > { %p998_p7 = scmp.ge.s32.totalorder %s1278_s18, 1  ;;  %p139_p8 = scmp.lt.s32.totalorder %s1278_s18, 3 }
   0xd   : > { %s1597_s26 = scalar_select %p1354_p6, 1, 0 }
   0xe   : > { %p1595_p9 = scmp.eq.s32.totalorder %s1333_s19, 0  ;;  %p1361_p10 = pnand %p998_p7, %p139_p8 }
   0xf   : > { %s1280_s28 = smov [#allocation2]   ;;  %s1281_s5 = smov [#allocation5]  }
  0x10   : > { %s151_s29 = sshll.u32 %s1280_s28, 4  ;;  %p1100_p11 = pneg %p1361_p10  ;;  %s152_s29 = int_to_ptr.vmem [resolvable:$true] %s151_s29 }
  0x11   : > { %s164_s6 = sshll.u32 %s1281_s5, 4  ;;  %s1169_s7 = scalar_lea.vmem %s152_s29, 12800  ;;  %s165_s6 = int_to_ptr.vmem [resolvable:$true] %s164_s6 }
  0x12   : > { %p1369_p12 = pnand %p1595_p9, %p1100_p11  ;;  %p1170_p0 = scmp.ne.s32.totalorder %s152_s29, %s1169_s7 }
  0x13   : > { %p1177_p3 = scmp.lt.s32.totalorder %s152_s29, %s152_s29  ;;  %p1178_p4 = scmp.lt.s32.totalorder %s1169_s7, %s1169_s7 }
  0x14   : > { %p1160_p13 = pneg %p1369_p12 }
  0x15   : > { %p1179_p7 = por %p1178_p4, %p1177_p3 }
  0x16   : > { %p1172_p1 = pnand %p1170_p0, %p1160_p13 }
  0x18   : > { %p1173_p2 = pneg %p1172_p1 }
  0x1a   : > { %p1180_p8 = pnand %p1179_p7, %p1173_p2 }
  0x1c   : > { %1183 = shalt.err (!%p1180_p8)
}
  0x1d   : > { %s1282_s8 = smov 256   ;;  %s1283_s9 = smov 16  }
  0x1e   : > { %1103 = dma.hbm_to_vmem [thread:$0]  (!%p1369_p12), %s1591_s1, 12800, %s152_s29, [#allocation3], %s1282_s8, %s1282_s8, %s1283_s9  }
  0x1f   : > { %s1195_s12 = scalar_lea.vmem %s165_s6, 12800  ;;  %p1203_p9 = scmp.lt.s32.totalorder %s165_s6, %s165_s6 }
  0x20   : > { %p1196_p11 = scmp.ne.s32.totalorder %s165_s6, %s1195_s12  ;;  %p1204_p6 = scmp.lt.s32.totalorder %s1195_s12, %s1195_s12 }
  0x22   : > { %p1198_p0 = pnand %p1196_p11, %p1160_p13  ;;  %p1205_p3 = por %p1204_p6, %p1203_p9 }
  0x24   : > { %p1199_p1 = pneg %p1198_p0 }
  0x26   : > { %p1206_p2 = pnand %p1205_p3, %p1199_p1 }
  0x28   : > { %1209 = shalt.err (!%p1206_p2)
}
  0x29   : > { %1106 = dma.hbm_to_vmem [thread:$0]  (!%p1369_p12), %s1592_s2, 12800, %s165_s6, [#allocation6], %s1282_s8, %s1282_s8, %s1283_s9  }
  0x2a   : > { %191 = sbr.rel (%p1361_p10) target bundleno = 756 (0x2f4), region = 36  ;;  %p1600_p4 = scmp.eq.s32.totalorder (!%p1361_p10), %s1333_s19, 0 }
  0x2f   : > { %1253 = dma.done.wait (%p1600_p4), [#allocation3], 12800   ;;  %p1601_p13 = pmov %p1600_p4 }
  0x30   : > { %p1602_p7 = pmov %p1600_p4 }
  0x31   : > { %1255 = vsyncadd (%p1601_p13), [#allocation3], 4294954496 }
  0x32   : > { %1257 = dma.done.wait (%p1602_p7), [#allocation6], 12800   ;;  %p1603_p6 = pmov %p1600_p4 }
  0x33   : > { %v265_v0 = vld [vmem:[#allocation2 + $0xf8] sm:$0xff]  ;;  %v264_v2 = vld [vmem:[#allocation2 + $0xf0] sm:$0xff]  ;;  %v263_v4 = vld [vmem:[#allocation2 + $0xe8] sm:$0xff]  ;;  %p221_p9 = scmp.lt.s32.totalorder %s1333_s19, 1  ;;  %vm334_vm0 = vcmask 130048   ;;  %vm876_vm1 = vcmask 654336  }
  0x34   : > { %1259 = vsyncadd (%p1603_p6), [#allocation6], 4294954496  ;;  %v329_v1 = vld [vmem:[#allocation2 + $0x2f8] sm:$0xff]  ;;  %341 = vmatprep.subr.mxu0 %v265_v0  ;;  %v328_v3 = vld [vmem:[#allocation2 + $0x2f0] sm:$0xff]  ;;  %s1019_s27 = sshll.u32 %s1333_s19, 8  ;;  %s1284_s8 = smov [#allocation7]  }
  0x35   : > { %418 = vmatprep.subr.mxu1 %v329_v1  ;;  %v327_v5 = vld [vmem:[#allocation2 + $0x2e8] sm:$0xff]  ;;  %342 = vmatpush1.msra.mxu0 %v264_v2  ;;  %v262_v6 = vld [vmem:[#allocation2 + $0xe0] sm:$0xff]  ;;  %v261_v8 = vld [vmem:[#allocation2 + $0xd8] sm:$0xff]  ;;  %s1405_s20 = scalar_select %p221_p9, %s1333_s19, 1 }
  0x36   : > { %419 = vmatpush1.msra.mxu1 %v328_v3  ;;  %v326_v7 = vld [vmem:[#allocation2 + $0x2e0] sm:$0xff]  ;;  %343 = vmatprep.subr.mxu0 %v263_v4  ;;  %v325_v9 = vld [vmem:[#allocation2 + $0x2d8] sm:$0xff]  ;;  %v260_v10 = vld [vmem:[#allocation2 + $0xd0] sm:$0xff]  ;;  %s1544_s6 = scalar_lea.hbm %s1594_s4, %s1019_s27  ;;  %s1214_s9 = sshll.u32 %s1284_s8, 4  ;;  %s1215_s9 = int_to_ptr.vmem [resolvable:$false] %s1214_s9 }
  0x37   : > { %420 = vmatprep.subr.mxu1 %v327_v5  ;;  %v324_v11 = vld [vmem:[#allocation2 + $0x2d0] sm:$0xff]  ;;  %344 = vmatpush1.msra.mxu0 %v262_v6  ;;  %v259_v12 = vld [vmem:[#allocation2 + $0xc8] sm:$0xff]  ;;  %v258_v14 = vld [vmem:[#allocation2 + $0xc0] sm:$0xff]  ;;  %s1018_s22 = sshll.u32 %s1405_s20, 6  ;;  %s1216_s10 = scalar_lea.vmem %s1215_s9, 512 }
  0x38   : > { %421 = vmatpush1.msra.mxu1 %v326_v7  ;;  %v323_v13 = vld [vmem:[#allocation2 + $0x2c8] sm:$0xff]  ;;  %345 = vmatprep.subr.mxu0 %v261_v8  ;;  %v322_v15 = vld [vmem:[#allocation2 + $0x2c0] sm:$0xff]  ;;  %v257_v16 = vld [vmem:[#allocation2 + $0xb8] sm:$0xff]  ;;  %s1411_s28 = scalar_lea.vmem %s1590_s0, %s1018_s22  ;;  %s218_s22 = sand.u32 1, %s1270_s16  }
  0x39   : > { %422 = vmatprep.subr.mxu1 %v325_v9  ;;  %346 = vmatpush1.msra.mxu0 %v260_v10  ;;  %v321_v17 = vld [vmem:[#allocation2 + $0x2b8] sm:$0xff]  ;;  %v256_v18 = vld [vmem:[#allocation2 + $0xb0] sm:$0xff]  ;;  %v255_v20 = vld [vmem:[#allocation2 + $0xa8] sm:$0xff]  ;;  %s1005_s23 = sshll.u32 %s218_s22, 4  ;;  %s1550_s19 = scalar_lea.sflag [#allocation4], %s218_s22 }
  0x3a   : > { %423 = vmatpush1.msra.mxu1 %v324_v11  ;;  %347 = vmatprep.subr.mxu0 %v259_v12  ;;  %v320_v19 = vld [vmem:[#allocation2 + $0x2b0] sm:$0xff]  ;;  %v319_v21 = vld [vmem:[#allocation2 + $0x2a8] sm:$0xff]  ;;  %v254_v22 = vld [vmem:[#allocation2 + $0xa0] sm:$0xff] }
  0x3b   : > { %424 = vmatprep.subr.mxu1 %v323_v13  ;;  %348 = vmatpush1.msra.mxu0 %v258_v14  ;;  %v318_v23 = vld [vmem:[#allocation2 + $0x2a0] sm:$0xff]  ;;  %v253_v24 = vld [vmem:[#allocation2 + $0x98] sm:$0xff]  ;;  %v252_v26 = vld [vmem:[#allocation2 + $0x90] sm:$0xff] }
  0x3c   : > { %425 = vmatpush1.msra.mxu1 %v322_v15  ;;  %349 = vmatprep.subr.mxu0 %v257_v16  ;;  %v317_v25 = vld [vmem:[#allocation2 + $0x298] sm:$0xff]  ;;  %v316_v27 = vld [vmem:[#allocation2 + $0x290] sm:$0xff]  ;;  %v251_v28 = vld [vmem:[#allocation2 + $0x88] sm:$0xff] }
  0x3d   : > { %426 = vmatprep.subr.mxu1 %v321_v17  ;;  %350 = vmatpush1.msra.mxu0 %v256_v18  ;;  %v315_v29 = vld [vmem:[#allocation2 + $0x288] sm:$0xff]  ;;  %v250_v30 = vld [vmem:[#allocation2 + $0x80] sm:$0xff]  ;;  %v249_v32 = vld [vmem:[#allocation2 + $0x78] sm:$0xff] }
  0x3e   : > { %427 = vmatpush1.msra.mxu1 %v320_v19  ;;  %351 = vmatprep.subr.mxu0 %v255_v20  ;;  %v314_v31 = vld [vmem:[#allocation2 + $0x280] sm:$0xff]  ;;  %v313_v33 = vld [vmem:[#allocation2 + $0x278] sm:$0xff]  ;;  %v248_v34 = vld [vmem:[#allocation2 + $0x70] sm:$0xff] }
  0x3f   : > { %428 = vmatprep.subr.mxu1 %v319_v21  ;;  %352 = vmatpush1.msra.mxu0 %v254_v22  ;;  %v312_v35 = vld [vmem:[#allocation2 + $0x270] sm:$0xff]  ;;  %v247_v36 = vld [vmem:[#allocation2 + $0x68] sm:$0xff]  ;;  %v246_v38 = vld [vmem:[#allocation2 + $0x60] sm:$0xff] }
  0x40   : > { %429 = vmatpush1.msra.mxu1 %v318_v23  ;;  %353 = vmatprep.subr.mxu0 %v253_v24  ;;  %v311_v37 = vld [vmem:[#allocation2 + $0x268] sm:$0xff]  ;;  %v310_v39 = vld [vmem:[#allocation2 + $0x260] sm:$0xff]  ;;  %v245_v40 = vld [vmem:[#allocation2 + $0x58] sm:$0xff] }
  0x41   : > { %430 = vmatprep.subr.mxu1 %v317_v25  ;;  %354 = vmatpush1.msra.mxu0 %v252_v26  ;;  %v309_v41 = vld [vmem:[#allocation2 + $0x258] sm:$0xff]  ;;  %v244_v42 = vld [vmem:[#allocation2 + $0x50] sm:$0xff]  ;;  %v243_v44 = vld [vmem:[#allocation2 + $0x48] sm:$0xff] }
  0x42   : > { %431 = vmatpush1.msra.mxu1 %v316_v27  ;;  %355 = vmatprep.subr.mxu0 %v251_v28  ;;  %v308_v43 = vld [vmem:[#allocation2 + $0x250] sm:$0xff]  ;;  %v307_v45 = vld [vmem:[#allocation2 + $0x248] sm:$0xff]  ;;  %v242_v46 = vld [vmem:[#allocation2 + $0x40] sm:$0xff] }
  0x43   : > { %432 = vmatprep.subr.mxu1 %v315_v29  ;;  %356 = vmatpush1.msra.mxu0 %v250_v30  ;;  %v306_v47 = vld [vmem:[#allocation2 + $0x240] sm:$0xff]  ;;  %v241_v48 = vld [vmem:[#allocation2 + $0x38] sm:$0xff]  ;;  %v240_v50 = vld [vmem:[#allocation2 + $0x30] sm:$0xff] }
  0x44   : > { %433 = vmatpush1.msra.mxu1 %v314_v31  ;;  %357 = vmatprep.subr.mxu0 %v249_v32  ;;  %v305_v49 = vld [vmem:[#allocation2 + $0x238] sm:$0xff]  ;;  %v304_v51 = vld [vmem:[#allocation2 + $0x230] sm:$0xff]  ;;  %v239_v52 = vld [vmem:[#allocation2 + $0x28] sm:$0xff] }
  0x45   : > { %434 = vmatprep.subr.mxu1 %v313_v33  ;;  %358 = vmatpush1.msra.mxu0 %v248_v34  ;;  %v303_v53 = vld [vmem:[#allocation2 + $0x228] sm:$0xff]  ;;  %v238_v54 = vld [vmem:[#allocation2 + $0x20] sm:$0xff]  ;;  %v237_v56 = vld [vmem:[#allocation2 + $0x18] sm:$0xff] }
  0x46   : > { %435 = vmatpush1.msra.mxu1 %v312_v35  ;;  %359 = vmatprep.subr.mxu0 %v247_v36  ;;  %v302_v55 = vld [vmem:[#allocation2 + $0x220] sm:$0xff]  ;;  %v301_v57 = vld [vmem:[#allocation2 + $0x218] sm:$0xff]  ;;  %v236_v58 = vld [vmem:[#allocation2 + $0x10] sm:$0xff] }
  0x47   : > { %436 = vmatprep.subr.mxu1 %v311_v37  ;;  %360 = vmatpush1.msra.mxu0 %v246_v38  ;;  %v300_v59 = vld [vmem:[#allocation2 + $0x210] sm:$0xff]  ;;  %v235_v60 = vld [vmem:[#allocation2 + $0x8] sm:$0xff]  ;;  %v234_v62 = vld [vmem:[#allocation2] sm:$0xff] }
  0x48   : > { %437 = vmatpush1.msra.mxu1 %v310_v39  ;;  %361 = vmatprep.subr.mxu0 %v245_v40  ;;  %v299_v61 = vld [vmem:[#allocation2 + $0x208] sm:$0xff]  ;;  %v298_v63 = vld [vmem:[#allocation2 + $0x200] sm:$0xff]  ;;  %v297_v0 = vld [vmem:[#allocation2 + $0x1f8] sm:$0xff] }
  0x49   : > { %438 = vmatprep.subr.mxu1 %v309_v41  ;;  %362 = vmatpush1.msra.mxu0 %v244_v42  ;;  %v333_v1 = vld [vmem:[#allocation2 + $0x318] sm:$0xff]  ;;  %v296_v2 = vld [vmem:[#allocation2 + $0x1f0] sm:$0xff]  ;;  %v295_v4 = vld [vmem:[#allocation2 + $0x1e8] sm:$0xff] }
  0x4a   : > { %439 = vmatpush1.msra.mxu1 %v308_v43  ;;  %363 = vmatprep.subr.mxu0 %v243_v44  ;;  %v332_v3 = vld [vmem:[#allocation2 + $0x310] sm:$0xff]  ;;  %v331_v5 = vld [vmem:[#allocation2 + $0x308] sm:$0xff]  ;;  %v294_v6 = vld [vmem:[#allocation2 + $0x1e0] sm:$0xff] }
  0x4b   : > { %440 = vmatprep.subr.mxu1 %v307_v45  ;;  %364 = vmatpush1.msra.mxu0 %v242_v46  ;;  %v330_v7 = vld [vmem:[#allocation2 + $0x300] sm:$0xff]  ;;  %v1414_v8 = vld [vmem:[%s1411_s28 + $0x18] sm:$0xff]  ;;  %v1417_v10 = vld [vmem:[%s1411_s28 + $0x10] sm:$0xff] }
  0x4c   : > { %441 = vmatpush1.msra.mxu1 %v306_v47  ;;  %365 = vmatprep.subr.mxu0 %v241_v48  ;;  %v293_v9 = vld [vmem:[#allocation2 + $0x1d8] sm:$0xff]  ;;  %v292_v12 = vld [vmem:[#allocation2 + $0x1d0] sm:$0xff]  ;;  %v291_v14 = vld [vmem:[#allocation2 + $0x1c8] sm:$0xff] }
  0x4d   : > { %442 = vmatprep.subr.mxu1 %v305_v49  ;;  %366 = vmatpush1.msra.mxu0 %v240_v50  ;;  %v526_v11 = vld [vmem:[#allocation5 + $0xf8] sm:$0xff]  ;;  %v525_v13 = vld [vmem:[#allocation5 + $0xf0] sm:$0xff]  ;;  %v524_v15 = vld [vmem:[#allocation5 + $0xe8] sm:$0xff] }
  0x4e   : > { %443 = vmatpush1.msra.mxu1 %v304_v51  ;;  %367 = vmatprep.subr.mxu0 %v239_v52  ;;  %v290_v16 = vld [vmem:[#allocation2 + $0x1c0] sm:$0xff]  ;;  %v289_v18 = vld [vmem:[#allocation2 + $0x1b8] sm:$0xff]  ;;  %v288_v20 = vld [vmem:[#allocation2 + $0x1b0] sm:$0xff] }
  0x4f   : > { %444 = vmatprep.subr.mxu1 %v303_v53  ;;  %368 = vmatpush1.msra.mxu0 %v238_v54  ;;  %v523_v17 = vld [vmem:[#allocation5 + $0xe0] sm:$0xff]  ;;  %v522_v19 = vld [vmem:[#allocation5 + $0xd8] sm:$0xff]  ;;  %v521_v21 = vld [vmem:[#allocation5 + $0xd0] sm:$0xff] }
  0x50   : > { %445 = vmatpush1.msra.mxu1 %v302_v55  ;;  %369 = vmatprep.subr.mxu0 %v237_v56  ;;  %v287_v22 = vld [vmem:[#allocation2 + $0x1a8] sm:$0xff]  ;;  %v286_v24 = vld [vmem:[#allocation2 + $0x1a0] sm:$0xff]  ;;  %v285_v26 = vld [vmem:[#allocation2 + $0x198] sm:$0xff] }
  0x51   : > { %446 = vmatprep.subr.mxu1 %v301_v57  ;;  %370 = vmatpush1.msra.mxu0 %v236_v58  ;;  %v520_v23 = vld [vmem:[#allocation5 + $0xc8] sm:$0xff]  ;;  %v519_v25 = vld [vmem:[#allocation5 + $0xc0] sm:$0xff]  ;;  %v518_v27 = vld [vmem:[#allocation5 + $0xb8] sm:$0xff] }
  0x52   : > { %447 = vmatpush1.msra.mxu1 %v300_v59  ;;  %371 = vmatprep.subr.mxu0 %v235_v60  ;;  %v284_v28 = vld [vmem:[#allocation2 + $0x190] sm:$0xff]  ;;  %v283_v30 = vld [vmem:[#allocation2 + $0x188] sm:$0xff]  ;;  %v282_v32 = vld [vmem:[#allocation2 + $0x180] sm:$0xff] }
  0x53   : > { %448 = vmatprep.subr.mxu1 %v299_v61  ;;  %372 = vmatpush1.msra.mxu0 %v234_v62  ;;  %v517_v29 = vld [vmem:[#allocation5 + $0xb0] sm:$0xff]  ;;  %v516_v31 = vld [vmem:[#allocation5 + $0xa8] sm:$0xff]  ;;  %v515_v33 = vld [vmem:[#allocation5 + $0xa0] sm:$0xff] }
  0x54   : > { %449 = vmatpush1.msra.mxu1 %v298_v63  ;;  %373 = vmatprep.subr.mxu0 %v297_v0  ;;  %v281_v34 = vld [vmem:[#allocation2 + $0x178] sm:$0xff]  ;;  %v280_v36 = vld [vmem:[#allocation2 + $0x170] sm:$0xff]  ;;  %v279_v38 = vld [vmem:[#allocation2 + $0x168] sm:$0xff] }
  0x55   : > { %478 = vmatprep.subr.mxu1 %v333_v1  ;;  %374 = vmatpush2.msra.mxu0 %v296_v2  ;;  %v514_v35 = vld [vmem:[#allocation5 + $0x98] sm:$0xff]  ;;  %v513_v37 = vld [vmem:[#allocation5 + $0x90] sm:$0xff]  ;;  %v512_v39 = vld [vmem:[#allocation5 + $0x88] sm:$0xff] }
  0x56   : > { %479 = vmatpush2.msra.mxu1 %v332_v3  ;;  %375 = vmatprep.subr.mxu0 %v295_v4  ;;  %v278_v40 = vld [vmem:[#allocation2 + $0x160] sm:$0xff]  ;;  %v277_v42 = vld [vmem:[#allocation2 + $0x158] sm:$0xff]  ;;  %v276_v44 = vld [vmem:[#allocation2 + $0x150] sm:$0xff] }
  0x57   : > { %480 = vmatprep.subr.mxu1 %v331_v5  ;;  %376 = vmatpush2.msra.mxu0 %v294_v6  ;;  %v511_v41 = vld [vmem:[#allocation5 + $0x80] sm:$0xff]  ;;  %v510_v43 = vld [vmem:[#allocation5 + $0x78] sm:$0xff]  ;;  %v509_v45 = vld [vmem:[#allocation5 + $0x70] sm:$0xff] }
  0x58   : > { %481 = vmatpush2.msra.mxu1 %v330_v7  ;;  %1008 = vmatprep.mubr.msk.f32.mxu1 %vm334_vm0, %v1414_v8  ;;  %v275_v46 = vld [vmem:[#allocation2 + $0x148] sm:$0xff]  ;;  %v274_v48 = vld [vmem:[#allocation2 + $0x140] sm:$0xff]  ;;  %v273_v50 = vld [vmem:[#allocation2 + $0x138] sm:$0xff] }
  0x59   : > { %377 = vmatprep.subr.mxu0 %v293_v9  ;;  %483 = vmatmul.mubr.f32.vlgmr.msra.gmra.mxu1 %v1417_v10  ;;  %v508_v47 = vld [vmem:[#allocation5 + $0x68] sm:$0xff]  ;;  %v507_v49 = vld [vmem:[#allocation5 + $0x60] sm:$0xff]  ;;  %v506_v51 = vld [vmem:[#allocation5 + $0x58] sm:$0xff] }
  0x5a   : > { %595 = vmatprep.subr.mxu1 %v526_v11  ;;  %378 = vmatpush2.msra.mxu0 %v292_v12  ;;  %v272_v52 = vld [vmem:[#allocation2 + $0x130] sm:$0xff]  ;;  %v271_v54 = vld [vmem:[#allocation2 + $0x128] sm:$0xff]  ;;  %v270_v56 = vld [vmem:[#allocation2 + $0x120] sm:$0xff] }
  0x5b   : > { %596 = vmatpush1.msra.mxu1 %v525_v13  ;;  %379 = vmatprep.subr.mxu0 %v291_v14  ;;  %v505_v53 = vld [vmem:[#allocation5 + $0x50] sm:$0xff]  ;;  %v504_v55 = vld [vmem:[#allocation5 + $0x48] sm:$0xff]  ;;  %v503_v57 = vld [vmem:[#allocation5 + $0x40] sm:$0xff] }
  0x5c   : > { %597 = vmatprep.subr.mxu1 %v524_v15  ;;  %380 = vmatpush2.msra.mxu0 %v290_v16  ;;  %v269_v58 = vld [vmem:[#allocation2 + $0x118] sm:$0xff]  ;;  %v268_v60 = vld [vmem:[#allocation2 + $0x110] sm:$0xff]  ;;  %v267_v62 = vld [vmem:[#allocation2 + $0x108] sm:$0xff] }
  0x5d   : > { %598 = vmatpush1.msra.mxu1 %v523_v17  ;;  %381 = vmatprep.subr.mxu0 %v289_v18  ;;  %v502_v59 = vld [vmem:[#allocation5 + $0x38] sm:$0xff]  ;;  %v501_v61 = vld [vmem:[#allocation5 + $0x30] sm:$0xff]  ;;  %v500_v63 = vld [vmem:[#allocation5 + $0x28] sm:$0xff] }
  0x5e   : > { %599 = vmatprep.subr.mxu1 %v522_v19  ;;  %382 = vmatpush2.msra.mxu0 %v288_v20  ;;  %v266_v0 = vld [vmem:[#allocation2 + $0x100] sm:$0xff]  ;;  %v1423_v1 = vld [vmem:[%s1411_s28 + $0x8] sm:$0xff]  ;;  %v498_v4 = vld [vmem:[#allocation5 + $0x18] sm:$0xff] }
  0x5f   : > { %600 = vmatpush1.msra.mxu1 %v521_v21  ;;  %383 = vmatprep.subr.mxu0 %v287_v22  ;;  %v499_v2 = vld [vmem:[#allocation5 + $0x20] sm:$0xff]  ;;  %v590_v5 = vld [vmem:[#allocation5 + $0x2f8] sm:$0xff]  ;;  %v497_v6 = vld [vmem:[#allocation5 + $0x10] sm:$0xff] }
  0x60   : > { %601 = vmatprep.subr.mxu1 %v520_v23  ;;  %384 = vmatpush2.msra.mxu0 %v286_v24  ;;  %v1426_v3 = vld [vmem:[%s1411_s28] sm:$0xff]  ;;  %v589_v7 = vld [vmem:[#allocation5 + $0x2f0] sm:$0xff]  ;;  %v496_v9 = vld [vmem:[#allocation5 + $0x8] sm:$0xff] }
  0x61   : > { %602 = vmatpush1.msra.mxu1 %v519_v25  ;;  %385 = vmatprep.subr.mxu0 %v285_v26  ;;  %v588_v11 = vld [vmem:[#allocation5 + $0x2e8] sm:$0xff]  ;;  %v495_v12 = vld [vmem:[#allocation5] sm:$0xff]  ;;  %v558_v14 = vld [vmem:[#allocation5 + $0x1f8] sm:$0xff] }
  0x62   : > { %603 = vmatprep.subr.mxu1 %v518_v27  ;;  %386 = vmatpush2.msra.mxu0 %v284_v28  ;;  %v587_v13 = vld [vmem:[#allocation5 + $0x2e0] sm:$0xff]  ;;  %v586_v15 = vld [vmem:[#allocation5 + $0x2d8] sm:$0xff]  ;;  %v557_v16 = vld [vmem:[#allocation5 + $0x1f0] sm:$0xff] }
  0x63   : > { %604 = vmatpush1.msra.mxu1 %v517_v29  ;;  %387 = vmatprep.subr.mxu0 %v283_v30  ;;  %v585_v17 = vld [vmem:[#allocation5 + $0x2d0] sm:$0xff]  ;;  %v556_v18 = vld [vmem:[#allocation5 + $0x1e8] sm:$0xff]  ;;  %v555_v20 = vld [vmem:[#allocation5 + $0x1e0] sm:$0xff] }
  0x64   : > { %605 = vmatprep.subr.mxu1 %v516_v31  ;;  %388 = vmatpush2.msra.mxu0 %v282_v32  ;;  %v584_v19 = vld [vmem:[#allocation5 + $0x2c8] sm:$0xff]  ;;  %v583_v21 = vld [vmem:[#allocation5 + $0x2c0] sm:$0xff]  ;;  %v554_v22 = vld [vmem:[#allocation5 + $0x1d8] sm:$0xff] }
  0x65   : > { %606 = vmatpush1.msra.mxu1 %v515_v33  ;;  %389 = vmatprep.subr.mxu0 %v281_v34  ;;  %v582_v23 = vld [vmem:[#allocation5 + $0x2b8] sm:$0xff]  ;;  %v553_v24 = vld [vmem:[#allocation5 + $0x1d0] sm:$0xff]  ;;  %v552_v26 = vld [vmem:[#allocation5 + $0x1c8] sm:$0xff] }
  0x66   : > { %607 = vmatprep.subr.mxu1 %v514_v35  ;;  %390 = vmatpush2.msra.mxu0 %v280_v36  ;;  %v581_v25 = vld [vmem:[#allocation5 + $0x2b0] sm:$0xff]  ;;  %v580_v27 = vld [vmem:[#allocation5 + $0x2a8] sm:$0xff]  ;;  %v551_v28 = vld [vmem:[#allocation5 + $0x1c0] sm:$0xff] }
  0x67   : > { %608 = vmatpush1.msra.mxu1 %v513_v37  ;;  %391 = vmatprep.subr.mxu0 %v279_v38  ;;  %v579_v29 = vld [vmem:[#allocation5 + $0x2a0] sm:$0xff]  ;;  %v550_v30 = vld [vmem:[#allocation5 + $0x1b8] sm:$0xff]  ;;  %v549_v32 = vld [vmem:[#allocation5 + $0x1b0] sm:$0xff] }
  0x68   : > { %609 = vmatprep.subr.mxu1 %v512_v39  ;;  %392 = vmatpush2.msra.mxu0 %v278_v40  ;;  %v578_v31 = vld [vmem:[#allocation5 + $0x298] sm:$0xff]  ;;  %v577_v33 = vld [vmem:[#allocation5 + $0x290] sm:$0xff]  ;;  %v548_v34 = vld [vmem:[#allocation5 + $0x1a8] sm:$0xff] }
  0x69   : > { %610 = vmatpush1.msra.mxu1 %v511_v41  ;;  %393 = vmatprep.subr.mxu0 %v277_v42  ;;  %v576_v35 = vld [vmem:[#allocation5 + $0x288] sm:$0xff]  ;;  %v547_v36 = vld [vmem:[#allocation5 + $0x1a0] sm:$0xff]  ;;  %v546_v38 = vld [vmem:[#allocation5 + $0x198] sm:$0xff] }
  0x6a   : > { %611 = vmatprep.subr.mxu1 %v510_v43  ;;  %394 = vmatpush2.msra.mxu0 %v276_v44  ;;  %v575_v37 = vld [vmem:[#allocation5 + $0x280] sm:$0xff]  ;;  %v574_v39 = vld [vmem:[#allocation5 + $0x278] sm:$0xff]  ;;  %v545_v40 = vld [vmem:[#allocation5 + $0x190] sm:$0xff] }
  0x6b   : > { %612 = vmatpush1.msra.mxu1 %v509_v45  ;;  %395 = vmatprep.subr.mxu0 %v275_v46  ;;  %v573_v41 = vld [vmem:[#allocation5 + $0x270] sm:$0xff]  ;;  %v544_v42 = vld [vmem:[#allocation5 + $0x188] sm:$0xff]  ;;  %v543_v44 = vld [vmem:[#allocation5 + $0x180] sm:$0xff] }
  0x6c   : > { %613 = vmatprep.subr.mxu1 %v508_v47  ;;  %396 = vmatpush2.msra.mxu0 %v274_v48  ;;  %v572_v43 = vld [vmem:[#allocation5 + $0x268] sm:$0xff]  ;;  %v571_v45 = vld [vmem:[#allocation5 + $0x260] sm:$0xff]  ;;  %v542_v46 = vld [vmem:[#allocation5 + $0x178] sm:$0xff] }
  0x6d   : > { %614 = vmatpush1.msra.mxu1 %v507_v49  ;;  %397 = vmatprep.subr.mxu0 %v273_v50  ;;  %v570_v47 = vld [vmem:[#allocation5 + $0x258] sm:$0xff]  ;;  %v541_v48 = vld [vmem:[#allocation5 + $0x170] sm:$0xff]  ;;  %v540_v50 = vld [vmem:[#allocation5 + $0x168] sm:$0xff] }
  0x6e   : > { %615 = vmatprep.subr.mxu1 %v506_v51  ;;  %398 = vmatpush2.msra.mxu0 %v272_v52  ;;  %v569_v49 = vld [vmem:[#allocation5 + $0x250] sm:$0xff]  ;;  %v568_v51 = vld [vmem:[#allocation5 + $0x248] sm:$0xff]  ;;  %v539_v52 = vld [vmem:[#allocation5 + $0x160] sm:$0xff] }
  0x6f   : > { %616 = vmatpush1.msra.mxu1 %v505_v53  ;;  %399 = vmatprep.subr.mxu0 %v271_v54  ;;  %v567_v53 = vld [vmem:[#allocation5 + $0x240] sm:$0xff]  ;;  %v538_v54 = vld [vmem:[#allocation5 + $0x158] sm:$0xff] }
  0x70   : > { %617 = vmatprep.subr.mxu1 %v504_v55  ;;  %400 = vmatpush2.msra.mxu0 %v270_v56  ;;  %v566_v55 = vld [vmem:[#allocation5 + $0x238] sm:$0xff]  ;;  %v537_v56 = vld [vmem:[#allocation5 + $0x150] sm:$0xff] }
  0x71   : > { %618 = vmatpush1.msra.mxu1 %v503_v57  ;;  %401 = vmatprep.subr.mxu0 %v269_v58  ;;  %v565_v57 = vld [vmem:[#allocation5 + $0x230] sm:$0xff]  ;;  %v536_v58 = vld [vmem:[#allocation5 + $0x148] sm:$0xff] }
  0x72   : > { %619 = vmatprep.subr.mxu1 %v502_v59  ;;  %402 = vmatpush2.msra.mxu0 %v268_v60  ;;  %v564_v59 = vld [vmem:[#allocation5 + $0x228] sm:$0xff]  ;;  %v535_v60 = vld [vmem:[#allocation5 + $0x140] sm:$0xff] }
  0x73   : > { %620 = vmatpush1.msra.mxu1 %v501_v61  ;;  %403 = vmatprep.subr.mxu0 %v267_v62  ;;  %v563_v61 = vld [vmem:[#allocation5 + $0x220] sm:$0xff]  ;;  %v534_v62 = vld [vmem:[#allocation5 + $0x138] sm:$0xff] }
  0x74   : > { %621 = vmatprep.subr.mxu1 %v500_v63  ;;  %404 = vmatpush2.msra.mxu0 %v266_v0  ;;  %v562_v63 = vld [vmem:[#allocation5 + $0x218] sm:$0xff]  ;;  %v231_v0 = vld [vmem:[%s1411_s28 + $0x28] sm:$0xff] }
  0x75   : > { %405 = vmatprep.mubr.f32.mxu0 %v1423_v1  ;;  %622 = vmatpush1.msra.mxu1 %v499_v2  ;;  %v233_v2 = vld [vmem:[%s1411_s28 + $0x38] sm:$0xff] }
  0x76   : > { %406 = vmatmul.mubr.f32.vlgmr.msra.gmra.mxu0 %v1426_v3  ;;  %623 = vmatprep.subr.mxu1 %v498_v4  ;;  %v533_v4 = vld [vmem:[#allocation5 + $0x130] sm:$0xff] }
  0x77   : > { %672 = vmatprep.subr.mxu0 %v590_v5  ;;  %624 = vmatpush1.msra.mxu1 %v497_v6  ;;  %v561_v5 = vld [vmem:[#allocation5 + $0x210] sm:$0xff]  ;;  %v230_v6 = vld [vmem:[%s1411_s28 + $0x20] sm:$0xff] }
  0x78   : > { %673 = vmatpush1.msra.mxu0 %v589_v7  ;;  %625 = vmatprep.subr.mxu1 %v496_v9  ;;  %v232_v7 = vld [vmem:[%s1411_s28 + $0x30] sm:$0xff]  ;;  %v532_v9 = vld [vmem:[#allocation5 + $0x128] sm:$0xff]  ;;  %s220_s28 = scalar_lea.vmem [#allocation7], %s1005_s23 }
  0x79   : > { %674 = vmatprep.subr.mxu0 %v588_v11  ;;  %626 = vmatpush1.msra.mxu1 %v495_v12  ;;  %v560_v11 = vld [vmem:[#allocation5 + $0x208] sm:$0xff]  ;;  %v531_v12 = vld [vmem:[#allocation5 + $0x120] sm:$0xff]  ;;  %s913_s29 = sshll.u32 %s220_s28, 4  ;;  %s1546_s29 = int_to_ptr.vmem [resolvable:$true] %s913_s29 }
  0x7a   : > { %675 = vmatpush1.msra.mxu0 %v587_v13  ;;  %627 = vmatprep.subr.mxu1 %v558_v14  ;;  %v559_v13 = vld [vmem:[#allocation5 + $0x200] sm:$0xff]  ;;  %v530_v14 = vld [vmem:[#allocation5 + $0x118] sm:$0xff]  ;;  %s1210_s7 = scalar_lea.vmem %s1546_s29, 256  ;;  %p1217_p11 = scmp.lt.s32.totalorder %s1546_s29, %s1215_s9 }
  0x7b   : > { %676 = vmatprep.subr.mxu0 %v586_v15  ;;  %628 = vmatpush2.msra.mxu1 %v557_v16  ;;  %v594_v15 = vld [vmem:[#allocation5 + $0x318] sm:$0xff]  ;;  %v529_v16 = vld [vmem:[#allocation5 + $0x110] sm:$0xff]  ;;  %p1211_p10 = scmp.ne.s32.totalorder %s1546_s29, %s1210_s7  ;;  %p1218_p0 = scmp.lt.s32.totalorder %s1216_s10, %s1210_s7 }
  0x7c   : > { %677 = vmatpush1.msra.mxu0 %v585_v17  ;;  %629 = vmatprep.subr.mxu1 %v556_v18  ;;  %v593_v17 = vld [vmem:[#allocation5 + $0x310] sm:$0xff]  ;;  %v528_v18 = vld [vmem:[#allocation5 + $0x108] sm:$0xff] }
  0x7d   : > { %678 = vmatprep.subr.mxu0 %v584_v19  ;;  %630 = vmatpush2.msra.mxu1 %v555_v20  ;;  %v592_v19 = vld [vmem:[#allocation5 + $0x308] sm:$0xff]  ;;  %v527_v20 = vld [vmem:[#allocation5 + $0x100] sm:$0xff]  ;;  %p1212_p12 = pnand %p1211_p10, %p1350_p5  ;;  %p1219_p1 = por %p1218_p0, %p1217_p11 }
  0x7e   : > { %679 = vmatpush1.msra.mxu0 %v583_v21  ;;  %631 = vmatprep.subr.mxu1 %v554_v22  ;;  %v591_v21 = vld [vmem:[#allocation5 + $0x300] sm:$0xff]  ;;  %v792_v22 = vld [vmem:[%s1593_s3 + $0xf8] sm:$0xff] }
  0x7f   : > { %680 = vmatprep.subr.mxu0 %v582_v23  ;;  %632 = vmatpush2.msra.mxu1 %v553_v24  ;;  %v774_v23 = vld [vmem:[%s1593_s3 + $0x68] sm:$0xff]  ;;  %v789_v24 = vld [vmem:[%s1593_s3 + $0xe0] sm:$0xff]  ;;  %p1213_p8 = pneg %p1212_p12 }
  0x80   : > { %681 = vmatpush1.msra.mxu0 %v581_v25  ;;  %633 = vmatprep.subr.mxu1 %v552_v26  ;;  %v773_v25 = vld [vmem:[%s1593_s3 + $0x60] sm:$0xff]  ;;  %v788_v26 = vld [vmem:[%s1593_s3 + $0xd8] sm:$0xff] }
  0x81   : > { %682 = vmatprep.subr.mxu0 %v580_v27  ;;  %634 = vmatpush2.msra.mxu1 %v551_v28  ;;  %v772_v27 = vld [vmem:[%s1593_s3 + $0x58] sm:$0xff]  ;;  %v787_v28 = vld [vmem:[%s1593_s3 + $0xd0] sm:$0xff]  ;;  %p1220_p3 = pnand %p1219_p1, %p1213_p8 }
  0x82   : > { %683 = vmatpush1.msra.mxu0 %v579_v29  ;;  %635 = vmatprep.subr.mxu1 %v550_v30  ;;  %v771_v29 = vld [vmem:[%s1593_s3 + $0x50] sm:$0xff]  ;;  %v786_v30 = vld [vmem:[%s1593_s3 + $0xc8] sm:$0xff] }
  0x83   : > { %684 = vmatprep.subr.mxu0 %v578_v31  ;;  %636 = vmatpush2.msra.mxu1 %v549_v32  ;;  %v770_v31 = vld [vmem:[%s1593_s3 + $0x48] sm:$0xff]  ;;  %v785_v32 = vld [vmem:[%s1593_s3 + $0xc0] sm:$0xff] }
  0x84   : > { %685 = vmatpush1.msra.mxu0 %v577_v33  ;;  %637 = vmatprep.subr.mxu1 %v548_v34  ;;  %v769_v33 = vld [vmem:[%s1593_s3 + $0x40] sm:$0xff]  ;;  %v784_v34 = vld [vmem:[%s1593_s3 + $0xb8] sm:$0xff] }
  0x85   : > { %686 = vmatprep.subr.mxu0 %v576_v35  ;;  %638 = vmatpush2.msra.mxu1 %v547_v36  ;;  %v768_v35 = vld [vmem:[%s1593_s3 + $0x38] sm:$0xff]  ;;  %v783_v36 = vld [vmem:[%s1593_s3 + $0xb0] sm:$0xff] }
  0x86   : > { %687 = vmatpush1.msra.mxu0 %v575_v37  ;;  %639 = vmatprep.subr.mxu1 %v546_v38  ;;  %v767_v37 = vld [vmem:[%s1593_s3 + $0x30] sm:$0xff]  ;;  %v782_v38 = vld [vmem:[%s1593_s3 + $0xa8] sm:$0xff] }
  0x87   : > { %688 = vmatprep.subr.mxu0 %v574_v39  ;;  %640 = vmatpush2.msra.mxu1 %v545_v40  ;;  %v766_v39 = vld [vmem:[%s1593_s3 + $0x28] sm:$0xff]  ;;  %v781_v40 = vld [vmem:[%s1593_s3 + $0xa0] sm:$0xff] }
  0x88   : > { %689 = vmatpush1.msra.mxu0 %v573_v41  ;;  %641 = vmatprep.subr.mxu1 %v544_v42  ;;  %v765_v41 = vld [vmem:[%s1593_s3 + $0x20] sm:$0xff]  ;;  %v780_v42 = vld [vmem:[%s1593_s3 + $0x98] sm:$0xff] }
  0x89   : > { %690 = vmatprep.subr.mxu0 %v572_v43  ;;  %642 = vmatpush2.msra.mxu1 %v543_v44  ;;  %v764_v43 = vld [vmem:[%s1593_s3 + $0x18] sm:$0xff]  ;;  %v779_v44 = vld [vmem:[%s1593_s3 + $0x90] sm:$0xff] }
  0x8a   : > { %691 = vmatpush1.msra.mxu0 %v571_v45  ;;  %643 = vmatprep.subr.mxu1 %v542_v46  ;;  %v763_v45 = vld [vmem:[%s1593_s3 + $0x10] sm:$0xff]  ;;  %v778_v46 = vld [vmem:[%s1593_s3 + $0x88] sm:$0xff] }
  0x8b   : > { %692 = vmatprep.subr.mxu0 %v570_v47  ;;  %644 = vmatpush2.msra.mxu1 %v541_v48  ;;  %v762_v47 = vld [vmem:[%s1593_s3 + $0x8] sm:$0xff]  ;;  %v777_v48 = vld [vmem:[%s1593_s3 + $0x80] sm:$0xff] }
  0x8c   : > { %693 = vmatpush1.msra.mxu0 %v569_v49  ;;  %645 = vmatprep.subr.mxu1 %v540_v50  ;;  %v761_v49 = vld [vmem:[%s1593_s3] sm:$0xff] }
  0x8d   : > { %694 = vmatprep.subr.mxu0 %v568_v51  ;;  %646 = vmatpush2.msra.mxu1 %v539_v52 }
  0x8e   : > { %695 = vmatpush1.msra.mxu0 %v567_v53  ;;  %647 = vmatprep.subr.mxu1 %v538_v54 }
  0x8f   : > { %696 = vmatprep.subr.mxu0 %v566_v55  ;;  %648 = vmatpush2.msra.mxu1 %v537_v56 }
  0x90   : > { %697 = vmatpush1.msra.mxu0 %v565_v57  ;;  %649 = vmatprep.subr.mxu1 %v536_v58 }
  0x91   : > { %698 = vmatprep.subr.mxu0 %v564_v59  ;;  %650 = vmatpush2.msra.mxu1 %v535_v60 }
  0x92   : > { %699 = vmatpush1.msra.mxu0 %v563_v61  ;;  %651 = vmatprep.subr.mxu1 %v534_v62 }
  0x93   : > { %700 = vmatprep.subr.mxu0 %v562_v63  ;;  %411 = vmatprep.mubr.f32.mxu0 %v231_v0 }
  0x94   : > { %1009 = vmatprep.mubr.msk.f32.mxu1 %vm334_vm0, %v233_v2  ;;  %652 = vmatpush2.msra.mxu1 %v533_v4 }
  0x95   : > { %701 = vmatpush1.msra.mxu0 %v561_v5  ;;  %489 = vmatmul.mubr.f32.gmra.mxu1 %v232_v7 }
  0x96   : > { %412 = vmatmul.mubr.f32.gmra.mxu0 %v230_v6  ;;  %653 = vmatprep.subr.mxu1 %v532_v9 }
  0x97   : > { %702 = vmatprep.subr.mxu0 %v560_v11  ;;  %654 = vmatpush2.msra.mxu1 %v531_v12 }
  0x98   : > { %703 = vmatpush1.msra.mxu0 %v559_v13  ;;  %655 = vmatprep.subr.mxu1 %v530_v14 }
  0x99   : > { %732 = vmatprep.subr.mxu0 %v594_v15  ;;  %656 = vmatpush2.msra.mxu1 %v529_v16 }
  0x9a   : > { %733 = vmatpush2.msra.mxu0 %v593_v17  ;;  %657 = vmatprep.subr.mxu1 %v528_v18 }
  0x9b   : > { %734 = vmatprep.subr.mxu0 %v592_v19  ;;  %658 = vmatpush2.msra.mxu1 %v527_v20 }
  0x9c   : > { %659 = vmatprep.mubr.f32.mxu1 %v1423_v1  ;;  %735 = vmatpush2.msra.mxu0 %v591_v21  ;;  %v776_v1 = vld [vmem:[%s1593_s3 + $0x78] sm:$0xff] }
  0x9d   : > { %1010 = vmatprep.mubr.msk.f32.mxu0 %vm334_vm0, %v1414_v8  ;;  %660 = vmatmul.mubr.f32.vlgmr.msra.gmra.mxu1 %v1426_v3  ;;  %v791_v8 = vld [vmem:[%s1593_s3 + $0xf0] sm:$0xff]  ;;  %v790_v3 = vld [vmem:[%s1593_s3 + $0xe8] sm:$0xff] }
  0x9e   : > { %737 = vmatmul.mubr.f32.vlgmr.msra.gmra.mxu0 %v1417_v10  ;;  %665 = vmatprep.mubr.f32.mxu1 %v231_v0  ;;  %v775_v10 = vld [vmem:[%s1593_s3 + $0x70] sm:$0xff] }
  0x9f   : > { %1011 = vmatprep.mubr.msk.f32.mxu0 %vm334_vm0, %v233_v2  ;;  %1020 = vmatprep.subr.mxu0 %v792_v22 }
  0xa0   : > { %1058 = vmatprep.subr.mxu1 %v792_v22  ;;  %1021 = vmatpush3.msra.mxu0 %v776_v1 }
  0xa1   : > { %666 = vmatmul.mubr.f32.gmra.mxu1 %v230_v6  ;;  %1022 = vmatprep.subr.mxu0 %v791_v8 }
  0xa2   : > { %743 = vmatmul.mubr.f32.gmra.mxu0 %v232_v7  ;;  %1074 = vmatpush3.msra.mxu1 %v776_v1 }
  0xa3   : > { %1059 = vmatprep.subr.mxu1 %v791_v8  ;;  %1023 = vmatpush3.msra.mxu0 %v775_v10 }
  0xa4   : > { %1075 = vmatpush3.msra.mxu1 %v775_v10  ;;  %1024 = vmatprep.subr.mxu0 %v790_v3 }
  0xa5   : > { %1060 = vmatprep.subr.mxu1 %v790_v3  ;;  %1025 = vmatpush3.msra.mxu0 %v774_v23 }
  0xa6   : > { %1076 = vmatpush3.msra.mxu1 %v774_v23  ;;  %1026 = vmatprep.subr.mxu0 %v789_v24 }
  0xa7   : > { %1061 = vmatprep.subr.mxu1 %v789_v24  ;;  %1027 = vmatpush3.msra.mxu0 %v773_v25 }
  0xa8   : > { %1077 = vmatpush3.msra.mxu1 %v773_v25  ;;  %1028 = vmatprep.subr.mxu0 %v788_v26 }
  0xa9   : > { %1062 = vmatprep.subr.mxu1 %v788_v26  ;;  %1029 = vmatpush3.msra.mxu0 %v772_v27 }
  0xaa   : > { %1078 = vmatpush3.msra.mxu1 %v772_v27  ;;  %1030 = vmatprep.subr.mxu0 %v787_v28 }
  0xab   : > { %1063 = vmatprep.subr.mxu1 %v787_v28  ;;  %1031 = vmatpush3.msra.mxu0 %v771_v29 }
  0xac   : > { %1079 = vmatpush3.msra.mxu1 %v771_v29  ;;  %1032 = vmatprep.subr.mxu0 %v786_v30 }
  0xad   : > { %1064 = vmatprep.subr.mxu1 %v786_v30  ;;  %1033 = vmatpush3.msra.mxu0 %v770_v31 }
  0xae   : > { %1080 = vmatpush3.msra.mxu1 %v770_v31  ;;  %1034 = vmatprep.subr.mxu0 %v785_v32 }
  0xaf   : > { %1065 = vmatprep.subr.mxu1 %v785_v32  ;;  %1035 = vmatpush3.msra.mxu0 %v769_v33 }
  0xb0   : > { %1081 = vmatpush3.msra.mxu1 %v769_v33  ;;  %1036 = vmatprep.subr.mxu0 %v784_v34 }
  0xb1   : > { %1066 = vmatprep.subr.mxu1 %v784_v34  ;;  %1037 = vmatpush3.msra.mxu0 %v768_v35 }
  0xb2   : > { %1082 = vmatpush3.msra.mxu1 %v768_v35  ;;  %1038 = vmatprep.subr.mxu0 %v783_v36 }
  0xb3   : > { %1067 = vmatprep.subr.mxu1 %v783_v36  ;;  %1039 = vmatpush3.msra.mxu0 %v767_v37 }
  0xb4   : > { %1083 = vmatpush3.msra.mxu1 %v767_v37  ;;  %1040 = vmatprep.subr.mxu0 %v782_v38 }
  0xb5   : > { %1068 = vmatprep.subr.mxu1 %v782_v38  ;;  %1041 = vmatpush3.msra.mxu0 %v766_v39 }
  0xb6   : > { %1084 = vmatpush3.msra.mxu1 %v766_v39  ;;  %1042 = vmatprep.subr.mxu0 %v781_v40 }
  0xb7   : > { %1069 = vmatprep.subr.mxu1 %v781_v40  ;;  %1043 = vmatpush3.msra.mxu0 %v765_v41 }
  0xb8   : > { %1085 = vmatpush3.msra.mxu1 %v765_v41  ;;  %1044 = vmatprep.subr.mxu0 %v780_v42 }
  0xb9   : > { %1070 = vmatprep.subr.mxu1 %v780_v42  ;;  %1045 = vmatpush3.msra.mxu0 %v764_v43 }
  0xba   : > { %1086 = vmatpush3.msra.mxu1 %v764_v43  ;;  %1046 = vmatprep.subr.mxu0 %v779_v44 }
  0xbb   : > { %1071 = vmatprep.subr.mxu1 %v779_v44  ;;  %1047 = vmatpush3.msra.mxu0 %v763_v45 }
  0xbc   : > { %1087 = vmatpush3.msra.mxu1 %v763_v45  ;;  %1048 = vmatprep.subr.mxu0 %v778_v46 }
  0xbd   : > { %1072 = vmatprep.subr.mxu1 %v778_v46  ;;  %1049 = vmatpush3.msra.mxu0 %v762_v47 }
  0xbe   : > { %1088 = vmatpush3.msra.mxu1 %v762_v47  ;;  %1050 = vmatprep.subr.mxu0 %v777_v48 }
  0xbf   : > { %1073 = vmatprep.subr.mxu1 %v777_v48  ;;  %1051 = vmatpush3.msra.mxu0 %v761_v49 }
  0xc0   : > { %1089 = vmatpush3.msra.mxu1 %v761_v49 }
 0x119   : > { %v484_v50 = vpop.f32.mrf.mxu1 }
 0x11b   : > { %v486_v52 = vpop.f32.mrf.mxu1 }
 0x136   : > { %v407_v51 = vpop.f32.mrf.mxu0 }
 0x137   : > { %v485_v62 = vadd.f32 %v484_v50, %v407_v51 }
 0x138   : > { %v409_v53 = vpop.f32.mrf.mxu0 }
 0x139   : > { %v487_v60 = vadd.f32 %v486_v52, %v409_v53  ;;  %v749_v13 = vmul.f32 %v485_v62, %v485_v62 }
 0x13b   : > { %v750_v7 = vmul.f32 %v487_v60, %v487_v60 }
 0x155   : > { %v490_v55 = vpop.f32.mrf.mxu1 }
 0x156   : > { %v413_v54 = vpop.f32.mrf.mxu0 }
 0x157   : > { %v492_v57 = vpop.f32.mrf.mxu1  ;;  %v491_v14 = vadd.f32 %v490_v55, %v413_v54 }
 0x158   : > { %v415_v56 = vpop.f32.mrf.mxu0 }
 0x159   : > { %v493_v9 = vadd.f32 %v492_v57, %v415_v56  ;;  %v751_v1 = vmul.f32 %v491_v14, %v491_v14 }
 0x15b   : > { %v752_v21 = vmul.f32 %v493_v9, %v493_v9 }
 0x15d   : > { %v661_v58 = vpop.f32.mrf.mxu1 }
 0x15e   : > { %v738_v59 = vpop.f32.mrf.mxu0 }
 0x15f   : > { %v739_v61 = vadd.f32 %v738_v59, %v661_v58  ;;  %v663_v63 = vpop.f32.mrf.mxu1 }
 0x160   : > { %v740_v0 = vpop.f32.mrf.mxu0 }
 0x161   : > { %v741_v2 = vadd.f32 %v740_v0, %v663_v63  ;;  %v753_v4 = vmul.f32 %v739_v61, %v739_v61  ;;  %v667_v5 = vpop.f32.mrf.mxu1 }
 0x162   : > { %v744_v6 = vpop.f32.mrf.mxu0 }
 0x163   : > { %v754_v11 = vmul.f32 %v741_v2, %v741_v2  ;;  %v745_v12 = vadd.f32 %v744_v6, %v667_v5  ;;  %v669_v15 = vpop.f32.mrf.mxu1  ;;  %v757_v19 = vadd.f32 %v753_v4, %v749_v13 }
 0x164   : > { %v746_v16 = vpop.f32.mrf.mxu0 }
 0x165   : > { %v758_v17 = vadd.f32 %v754_v11, %v750_v7  ;;  %v747_v18 = vadd.f32 %v746_v16, %v669_v15  ;;  %v755_v20 = vmul.f32 %v745_v12, %v745_v12 }
 0x167   : > { %v756_v22 = vmul.f32 %v747_v18, %v747_v18  ;;  %857 = vmatprep.mubr.f32.mxu0 %v758_v17  ;;  %v759_v10 = vadd.f32 %v755_v20, %v751_v1 }
 0x168   : > { %858 = vmatmul.mubr.f32.vlgmr.msra.gmra.mxu0 %v757_v19 }
 0x169   : > { %v760_v8 = vadd.f32 %v756_v22, %v752_v21 }
 0x16b   : > { %862 = vmatprep.mubr.f32.mxu1 %v760_v8 }
 0x16c   : > { %863 = vmatmul.mubr.f32.vlgmr.msra.gmra.mxu1 %v759_v10 }
 0x228   : > { %v1052_v3 = vpop.f32.mrf.mxu0 }
 0x22a   : > { %v1053_v23 = vpop.f32.mrf.mxu0 }
 0x22b   : > { %v1054_v24 = vadd.f32 %v1053_v23, %v1052_v3 }
 0x22c   : > { %v1055_v25 = vpop.f32.mrf.mxu1 }
 0x22d   : > { %v868_v26 = vmax.f32 %v1054_v24, 1e-10 }
 0x22e   : > { %v1056_v27 = vpop.f32.mrf.mxu1 }
 0x22f   : > { %1154 = vlog2.f32 %v868_v26  ;;  %v1057_v28 = vadd.f32 %v1056_v27, %v1055_v25 }
 0x231   : > { %v869_v29 = vmax.f32 %v1057_v28, 1e-10 }
 0x233   : > { %1156 = vlog2.f32 %v869_v29 }
 0x23c   : > { %v1155_v30 = vpop.eup %1154 }
 0x23d   : > { %v871_v31 = vmul.f32 0.6931472, %v1155_v30 }
 0x23f   : > { %v874_v32 = vmul.f32 0.4342945, %v871_v31 }
 0x240   : > { %v1157_v33 = vpop.eup %1156 }
 0x241   : > { %v877_v34 = vsel %vm876_vm1, %v874_v32, -inf  ;;  %v873_v35 = vmul.f32 0.6931472, %v1157_v33 }
 0x242   : > { %878 = vmax.xlane.f32.xlu0 %v877_v34 }
 0x243   : > { %v875_v36 = vmul.f32 0.4342945, %v873_v35 }
 0x245   : > { %v880_v37 = vsel %vm876_vm1, %v875_v36, -inf }
 0x246   : > { %881 = vmax.xlane.f32.xlu0 %v880_v37 }
 0x2cb   : > { %v879_v38 = vpop.xlane.xlu0 %878 }
 0x2cf   : > { %v882_v39 = vpop.xlane.xlu0 %881 }
 0x2d0   : > { %v883_v40 = vmax.f32 %v879_v38, %v882_v39 }
 0x2d2   : > { %v884_v41 = vrot.slane %v883_v40, 4 }
 0x2d4   : > { %v885_v42 = vmax.f32 %v883_v40, %v884_v41 }
 0x2d6   : > { %v886_v43 = vrot.slane %v885_v42, 2 }
 0x2d8   : > { %v887_v44 = vmax.f32 %v885_v42, %v886_v43 }
 0x2da   : > { %v888_v45 = vrot.slane %v887_v44, 1 }
 0x2dc   : > { %v889_v46 = vmax.f32 %v887_v44, %v888_v45 }
 0x2de   : > { %v1012_v47 = vadd.f32 -8.0, %v889_v46 }
 0x2e0   : > { %v891_v48 = vmax.f32 %v874_v32, %v1012_v47  ;;  %v892_v49 = vmax.f32 %v875_v36, %v1012_v47 }
 0x2e2   : > { %v893_v50 = vmul.f32 0.25, %v891_v48  ;;  %v894_v51 = vmul.f32 0.25, %v892_v49 }
 0x2e4   : > { %v895_v52 = vadd.f32 1.0, %v893_v50  ;;  %v896_v53 = vadd.f32 1.0, %v894_v51 }
 0x2e6   : > { %897 = vst.msk [vmem:[%s220_s28] sm:$0xff] %vm876_vm1, %v895_v52  ;;  %898 = vst.msk [vmem:[%s220_s28 + $0x8] sm:$0xff] %vm876_vm1, %v896_v53 }
 0x2e7   : > { %1223 = shalt.err (!%p1220_p3)
}
 0x2e8   : > { %s1224_s11 = scalar_lea.hbm %s1544_s6, 256  ;;  %s1228_s14 = scalar_lea.hbm %s1594_s4, 512 }
 0x2e9   : > { %p1225_p2 = scmp.ne.s32.totalorder %s1544_s6, %s1224_s11  ;;  %p1229_p7 = scmp.lt.s32.totalorder %s1544_s6, %s1594_s4 }
 0x2ea   : > { %p1230_p6 = scmp.lt.s32.totalorder %s1228_s14, %s1224_s11 }
 0x2eb   : > { %p1226_p4 = pnand %p1225_p2, %p1350_p5 }
 0x2ec   : > { %p1231_p9 = por %p1230_p6, %p1229_p7 }
 0x2ed   : > { %p1227_p13 = pneg %p1226_p4 }
 0x2ef   : > { %p1232_p10 = pnand %p1231_p9, %p1227_p13 }
 0x2f1   : > { %1235 = shalt.err (!%p1232_p10)
}
 0x2f2   : > { %s1285_s23 = smov 128   ;;  %s1286_s27 = smov 8  }
 0x2f3   : > { %1098 = dma.vmem_to_hbm [thread:$0]  (%p1350_p5), %s1546_s29, 256, %s1544_s6, %s1550_s19, %s1285_s23, %s1285_s23, %s1286_s27  }
 0x2f4 PF: > { %p1115_p12 = scmp.ge.s32.totalorder %s1278_s18, 2  ;;  %s928_s28 = sand.u32 1, %s1266_s15  }
 0x2f5   : > { %p1604_p8 = scmp.ne.s32.totalorder %s1597_s26, 0  ;;  %s929_s30 = scalar_lea.sflag [#allocation4], %s928_s28 }
 0x2f7   : > { %p1108_p11 = pnand %p1115_p12, %p1604_p8 }
 0x2f9   : > { %p1109_p0 = pneg %p1108_p11 }
 0x2fb   : > { %1261 = dma.done.wait (%p1109_p0), %s929_s30, 256  }
 0x2fc   : > { %1263 = vsyncadd (%p1109_p0), %s929_s30, 4294967040  ;;  %p16_p1 = scmp.ge.s32.totalorder %s1337_s21, 4   ;;  %s1605_s15 = smov %s1270_s16 }
 0x2fd   : > { %s1606_s16 = smov %s1274_s17  ;;  %s1607_s17 = smov %s1348_s24 }
 0x2fe   : > { %s1608_s18 = smov %s1337_s21  ;;  %18 = sbr.rel (!%p16_p1) target bundleno = 5 (0x5), region = 80 }
 0x303   :  { %934 = vsyncpa [#allocation3], 1 }
 0x304   :  { %936 = vsyncpa [#allocation3 + $0x1], 1 }
 0x305   :  { %937 = vsyncpa [#allocation6], 1 }
 0x306   :  { %938 = vsyncpa [#allocation4], 1 }
 0x307   :  { %940 = vsyncpa [#allocation4 + $0x1], 1 }

</bundles_post_ra>
